<compile_context>
chip_gen: v7x
topology: tpu7x:2x2x1
jax: 0.10.0
libtpu: 0.0.40
codegen_flags: <defaults>
</compile_context>

<pallas_src>
import functools
import math

import jax
import jax.numpy as jnp
from jax.experimental import pallas as pl
from jax.experimental.pallas import tpu as pltpu


def _linear_kernel(x_ref, w_ref, b_ref, o_ref, *, compute_dtype):
    # x_ref : (TILE_R, PACK*patch_len)        VMEM (streamed)
    # w_ref : (PACK*patch_len, PACK*d_model)  VMEM (block-diagonal W^T, resident)
    # b_ref : (1, PACK*d_model)               VMEM (f32, resident)
    # o_ref : (TILE_R, PACK*d_model)          VMEM (streamed)
    x = x_ref[...]
    if compute_dtype is not None:
        x = x.astype(compute_dtype)            # in-kernel cast: no extra HBM pass
    acc = jnp.dot(x, w_ref[...], preferred_element_type=jnp.float32)
    o_ref[...] = (acc + b_ref[...]).astype(o_ref.dtype)


def _round_up(v, m):
    return ((v + m - 1) // m) * m


def _pack_factor(patch_len, d_model, itemsize, max_weight_bytes=4 << 20,
                 max_pack=128):
    """Row-packing factor making packed K and N lane-dense (multiples of 128)."""
    def w_bytes(p):
        return (p * patch_len) * (p * d_model) * itemsize

    p_k = 128 // math.gcd(128, patch_len)   # packed K becomes a multiple of 128
    p_n = 128 // math.gcd(128, d_model)     # packed N becomes a multiple of 128
    p = p_k * p_n // math.gcd(p_k, p_n)     # lcm: both lane-dense
    if p <= max_pack and w_bytes(p) <= max_weight_bytes:
        return p
    if p_n <= max_pack and w_bytes(p_n) <= max_weight_bytes:
        return p_n                          # at least lane-dense output stores
    return 1


def token_embedding(x, weight, bias, *, tile_rows=8192, compute_dtype=None,
                    out_dtype=None, vmem_tile_budget_bytes=24 << 20):
    """y = x @ weight.T + bias (nn.Linear semantics).

    x             : (..., patch_len)
    weight        : (d_model, patch_len)
    bias          : (d_model,)
    tile_rows     : row-tile size of the lane-packed view (each packed row is
                    PACK original rows); capped by the VMEM tile budget.
    compute_dtype : optional dtype (e.g. jnp.bfloat16) for the MXU inputs; x is
                    cast inside the kernel, accumulation/bias stay in f32.
    out_dtype     : output dtype (default: x.dtype). bfloat16 cuts store traffic.
    """
    patch_len = x.shape[-1]
    d_model = weight.shape[0]
    lead_shape = x.shape[:-1]
    m = int(math.prod(lead_shape)) if lead_shape else 1
    out_dtype = jnp.dtype(out_dtype or x.dtype)

    if m == 0:  # empty leading dims -> empty output
        return jnp.zeros((*lead_shape, d_model), dtype=out_dtype)

    w_dtype = jnp.dtype(compute_dtype) if compute_dtype is not None else x.dtype
    pack = _pack_factor(patch_len, d_model, x.dtype.itemsize)
    k_pack = pack * patch_len
    n_pack = pack * d_model

    # Pad M only to a multiple of `pack` (skipped when it already divides);
    # the handful of padded rows are sliced off after the call.
    padded_m = _round_up(m, pack)
    packed_m = padded_m // pack

    x2d = x.reshape(m, patch_len)
    if padded_m != m:
        x2d = jnp.pad(x2d, ((0, padded_m - m), (0, 0)))
    x_packed = x2d.reshape(packed_m, k_pack)

    # Block-diagonal transposed weight: chunk p of a packed row (original row
    # pack*r + p) maps onto output chunk p.  Tiny, built once, resident in VMEM.
    wt = weight.T.astype(w_dtype)                          # (patch_len, d_model)
    w_packed = wt if pack == 1 else jnp.kron(jnp.eye(pack, dtype=w_dtype), wt)
    b_packed = jnp.tile(bias.astype(jnp.float32), pack).reshape(1, n_pack)

    # Row-tile size: as large as the VMEM budget allows (double-buffered x and
    # out streams), rounded to 32 packed rows (covers f32 and bf16 sublanes).
    bytes_per_row = 2 * (k_pack * x.dtype.itemsize + n_pack * out_dtype.itemsize)
    cap_rows = max(32, (vmem_tile_budget_bytes // bytes_per_row) // 32 * 32)
    tile_r = min(_round_up(max(32, int(tile_rows)), 32), cap_rows,
                 _round_up(packed_m, 32))
    num_tiles = pl.cdiv(packed_m, tile_r)
    # Prefer an even tile count (>1) so v7x's two TensorCores stay balanced.
    if num_tiles > 1 and num_tiles % 2 == 1:
        tile_r = _round_up(pl.cdiv(packed_m, num_tiles + 1), 32)
        num_tiles = pl.cdiv(packed_m, tile_r)

    kernel = functools.partial(_linear_kernel, compute_dtype=compute_dtype)

    out_packed = pl.pallas_call(
        kernel,
        out_shape=jax.ShapeDtypeStruct((packed_m, n_pack), out_dtype),
        grid_spec=pl.GridSpec(
            grid=(num_tiles,),
            in_specs=[
                pl.BlockSpec((tile_r, k_pack), lambda i: (i, 0)),   # x (streamed)
                pl.BlockSpec((k_pack, n_pack), lambda i: (0, 0)),   # W (resident)
                pl.BlockSpec((1, n_pack), lambda i: (0, 0)),        # b (resident)
            ],
            out_specs=pl.BlockSpec((tile_r, n_pack), lambda i: (i, 0)),
        ),
        compiler_params=pltpu.CompilerParams(
            # Row tiles are independent -> shard across v7x's two TensorCores.
            dimension_semantics=("parallel",),
            # Scoped-VMEM budget safe for v7x (64 MiB physical); tiles sized to
            # fit it via vmem_tile_budget_bytes above.
            vmem_limit_bytes=32 * 1024 * 1024,
        ),
    )(x_packed, w_packed, b_packed)

    out = out_packed.reshape(padded_m, d_model)
    if padded_m != m:
        out = out[:m]
    return out.reshape(*lead_shape, d_model)


if __name__ == "__main__":
    # Small shapes implied by the module: patches of a time series.
    batch, num_patches, patch_len, d_model = 2, 8, 16, 32

    key = jax.random.PRNGKey(0)
    kx, kw, kb = jax.random.split(key, 3)

    # nn.Linear default init: U(-1/sqrt(in_features), 1/sqrt(in_features)).
    bound = 1.0 / math.sqrt(patch_len)
    weight = jax.random.uniform(kw, (d_model, patch_len), jnp.float32,
                                minval=-bound, maxval=bound)
    bias = jax.random.uniform(kb, (d_model,), jnp.float32,
                              minval=-bound, maxval=bound)

    x = jax.random.normal(kx, (batch, num_patches, patch_len), jnp.float32)
    y_ref = x @ weight.T + bias

    # 1) Small f32 run (single partial tile) vs reference.
    y = jax.block_until_ready(token_embedding(x, weight, bias))
    assert y.shape == (batch, num_patches, d_model)
    assert jnp.allclose(y, y_ref, atol=1e-5, rtol=1e-5)

    # 2) Multi-tile run exercising the pipelined / parallel cdiv-grid path
    #    (packed_m = 256, tile_rows=64 -> 4 even row tiles).
    x_big = jax.random.normal(kx, (4, 512, patch_len), jnp.float32)
    y_big = jax.block_until_ready(
        token_embedding(x_big, weight, bias, tile_rows=64))
    assert y_big.shape == (4, 512, d_model)
    assert jnp.allclose(y_big, x_big @ weight.T + bias, atol=1e-5, rtol=1e-5)

    # 3) Ragged M (m=21, not a multiple of PACK=8 -> minimal pad + partial block).
    x_rag = jax.random.normal(kx, (3, 7, patch_len), jnp.float32)
    y_rag = jax.block_until_ready(token_embedding(x_rag, weight, bias))
    assert y_rag.shape == (3, 7, d_model)
    assert jnp.allclose(y_rag, x_rag @ weight.T + bias, atol=1e-5, rtol=1e-5)

    # 4) bf16 MXU path (cast inside the kernel) + bf16 stores; f32 accumulate.
    y_bf16 = jax.block_until_ready(
        token_embedding(x, weight, bias, compute_dtype=jnp.bfloat16,
                        out_dtype=jnp.bfloat16))
    assert y_bf16.dtype == jnp.bfloat16
    assert jnp.allclose(y_bf16.astype(jnp.float32), y_ref, atol=5e-2, rtol=5e-2)

    print("KERNEL_OK")
</pallas_src>

<mosaic_0001>
module attributes {stable_mosaic.version = 11 : i64} {
  func.func @_linear_kernel(%arg0: i32, %arg1: memref<32x128xf32, #tpu.memory_space<vmem>>, %arg2: memref<128x256xf32, #tpu.memory_space<vmem>>, %arg3: memref<1x256xf32, #tpu.memory_space<vmem>>, %arg4: memref<32x256xf32, #tpu.memory_space<vmem>>) attributes {dimension_semantics = [#tpu.dimension_semantics<parallel>], iteration_bounds = array<i64: 1>, scalar_prefetch = 0 : i64, scratch_operands = 0 : i64, tpu.core_type = #tpu.core_type<tc>, window_params = [{transform_indices = @transform_0, window_bounds = array<i64: 32, 128>}, {pipeline_mode = #tpu.pipeline_mode<synchronous>, transform_indices = @transform_1, window_bounds = array<i64: 128, 256>}, {pipeline_mode = #tpu.pipeline_mode<synchronous>, transform_indices = @transform_2, window_bounds = array<i64: 1, 256>}, {transform_indices = @transform_3, window_bounds = array<i64: 32, 256>}]} {
    %c0 = arith.constant 0 : index
    %c0_0 = arith.constant 0 : index
    %0 = vector.load %arg1[%c0, %c0_0] : memref<32x128xf32, #tpu.memory_space<vmem>>, vector<32x128xf32>
    %c0_1 = arith.constant 0 : index
    %c0_2 = arith.constant 0 : index
    %1 = vector.load %arg2[%c0_1, %c0_2] : memref<128x256xf32, #tpu.memory_space<vmem>>, vector<128x256xf32>
    %cst = arith.constant dense<0.000000e+00> : vector<32x256xf32>
    %2 = tpu.matmul %0, %1, %cst {dimension_numbers = #tpu.dot_dimension_numbers<[1], [0], [0], [1], [0, 0, 1, 1], [], []>} : vector<32x128xf32>, vector<128x256xf32>, vector<32x256xf32> -> vector<32x256xf32>
    %c0_3 = arith.constant 0 : index
    %c0_4 = arith.constant 0 : index
    %3 = vector.load %arg3[%c0_3, %c0_4] : memref<1x256xf32, #tpu.memory_space<vmem>>, vector<1x256xf32>
    %4 = vector.broadcast %3 : vector<1x256xf32> to vector<32x256xf32>
    %5 = arith.addf %2, %4 : vector<32x256xf32>
    %c0_5 = arith.constant 0 : index
    %c0_6 = arith.constant 0 : index
    %6 = vector.load %arg4[%c0_5, %c0_6] : memref<32x256xf32, #tpu.memory_space<vmem>>, vector<32x256xf32>
    tpu.vector_store %arg4[%c0_5, %c0_6], %5 {strides = array<i32>} : memref<32x256xf32, #tpu.memory_space<vmem>>, vector<32x256xf32>,
    return
  }
  func.func @transform_0(%arg0: i32) -> (i32, i32) {
    %c0_i32 = arith.constant 0 : i32
    %c0_i32_0 = arith.constant 0 : i32
    return %arg0, %c0_i32 : i32, i32
  }
  func.func @transform_1(%arg0: i32) -> (i32, i32) {
    %c0_i32 = arith.constant 0 : i32
    %c0_i32_0 = arith.constant 0 : i32
    %c0_i32_1 = arith.constant 0 : i32
    return %c0_i32, %c0_i32_0 : i32, i32
  }
  func.func @transform_2(%arg0: i32) -> (i32, i32) {
    %c0_i32 = arith.constant 0 : i32
    %c0_i32_0 = arith.constant 0 : i32
    %c0_i32_1 = arith.constant 0 : i32
    return %c0_i32, %c0_i32_0 : i32, i32
  }
  func.func @transform_3(%arg0: i32) -> (i32, i32) {
    %c0_i32 = arith.constant 0 : i32
    %c0_i32_0 = arith.constant 0 : i32
    return %arg0, %c0_i32 : i32, i32
  }
}

</mosaic_0001>

<bundles_post_ra>
// kernel: tpu_custom_call.1
= control target key start
LH: loop header
LB: loop body
LE: loop exit
PB: predicated region body
PF: predicated region fallthrough
CT: control target
= control target key end

     0   :  { %8 = vsyncpa [#allocation3], 0  ;;  %s523_s0 = inlined_call_operand.hbm [shape: f32[2,128], index: 0, kind: input, shape index: {}]   ;;  %s524_s1 = inlined_call_operand.hbm [shape: f32[128,256], index: 1, kind: input, shape index: {}]   ;;  %s525_s2 = inlined_call_operand.vmem [shape: f32[1,256], index: 2, kind: input, shape index: {}]   ;;  %s526_s3 = inlined_call_operand.hbm [shape: f32[2,256], index: 3, kind: output, shape index: {}]  }
   0x1   :  { %9 = vsyncpa [#allocation6], 0 }
   0x2   :  { %10 = vsyncpa [#allocation4], 0 }
   0x3   :  { %15 = vsyncadd [#allocation3], 480  ;;  %s449_s12 = smov [#allocation2]   ;;  %s377_s16 = scalar_lea.hbm %s523_s0, 32 }
   0x4   :  { %s16_s13 = sshll.u32 %s449_s12, 4  ;;  %p378_p0 = scmp.ne.s32.totalorder %s523_s0, %s377_s16  ;;  %s17_s13 = int_to_ptr.vmem [resolvable:$true] %s16_s13 }
   0x5   :  { %p381_p1 = scmp.lt.u32.totalorder %s377_s16, %s523_s0 }
   0x7   :  { %p383_p2 = pnand %p381_p1, %p378_p0 }
   0x9   :  { %386 = shalt.err (!%p383_p2)
}
   0xa   :  { %s387_s21 = scalar_lea.vmem %s17_s13, 32  ;;  %s391_s22 = scalar_lea.vmem %s17_s13, 512 }
   0xb   :  { %p388_p3 = scmp.ne.s32.totalorder %s17_s13, %s387_s21  ;;  %p392_p4 = scmp.lt.s32.totalorder %s17_s13, %s17_s13 }
   0xc   :  { %p393_p5 = scmp.lt.s32.totalorder %s391_s22, %s387_s21 }
   0xe   :  { %p394_p6 = por %p393_p5, %p392_p4 }
  0x10   :  { %p395_p7 = pnand %p394_p6, %p388_p3 }
  0x12   :  { %398 = shalt.err (!%p395_p7)
}
  0x13   :  { %s450_s23 = smov 32   ;;  %s451_s24 = smov 2  }
  0x14   :  { %22 = dma.hbm_to_vmem [thread:$0]  %s523_s0, 32, %s17_s13, [#allocation3], %s450_s23, %s450_s23, %s451_s24  }
  0x15   :  { %s452_s27 = smov [#allocation5]   ;;  %s399_s4 = scalar_lea.hbm %s524_s1, 4096 }
  0x16   :  { %s28_s28 = sshll.u32 %s452_s27, 4  ;;  %p400_p8 = scmp.ne.s32.totalorder %s524_s1, %s399_s4  ;;  %s29_s28 = int_to_ptr.vmem [resolvable:$true] %s28_s28 }
  0x17   :  { %p403_p9 = scmp.lt.u32.totalorder %s399_s4, %s524_s1 }
  0x19   :  { %p405_p10 = pnand %p403_p9, %p400_p8 }
  0x1b   :  { %408 = shalt.err (!%p405_p10)
}
  0x1c   :  { %s409_s9 = scalar_lea.vmem %s29_s28, 4096  ;;  %p414_p12 = scmp.lt.s32.totalorder %s29_s28, %s29_s28 }
  0x1d   :  { %p410_p11 = scmp.ne.s32.totalorder %s29_s28, %s409_s9  ;;  %p415_p13 = scmp.lt.s32.totalorder %s409_s9, %s409_s9 }
  0x1f   :  { %p416_p0 = por %p415_p13, %p414_p12 }
  0x21   :  { %p417_p1 = pnand %p416_p0, %p410_p11 }
  0x23   :  { %420 = shalt.err (!%p417_p1)
}
  0x24   :  { %s453_s0 = smov 256   ;;  %s454_s10 = smov 16  }
  0x25   :  { %34 = dma.hbm_to_vmem [thread:$0]  %s524_s1, 4096, %s29_s28, [#allocation6], %s453_s0, %s453_s0, %s454_s10  }
  0x26   :  { %443 = dma.done.wait [#allocation3], 512  }
  0x27   :  { %444 = vsyncadd [#allocation3], 4294966784 }
  0x28   :  { %445 = dma.done.wait [#allocation6], 4096  }
  0x29   :  { %446 = vsyncadd [#allocation6], 4294963200  ;;  %v455_v0 = vmov 0.0   ;;  %v48_v1 = vld [vmem:[#allocation5 + $0x8] sm:$0xff]  ;;  %v50_v2 = vld [vmem:[#allocation5 + $0x18] sm:$0xff]  ;;  %v81_v53 = vlaneseq }
  0x2a   :  { %155 = vmatprep.mubr.f32.mxu0 %v455_v0  ;;  %167 = vmatprep.mubr.f32.mxu1 %v455_v0  ;;  %v47_v3 = vld [vmem:[#allocation5] sm:$0xff]  ;;  %v318_v4 = vpack.c.bf16 %v50_v2, %v48_v1  ;;  %v49_v5 = vld [vmem:[#allocation5 + $0x10] sm:$0xff]  ;;  %v52_v6 = vld [vmem:[#allocation5 + $0x28] sm:$0xff]  ;;  %v456_v57 = vmov 1983009808  }
  0x2b   :  { %v54_v7 = vld [vmem:[#allocation5 + $0x38] sm:$0xff]  ;;  %v320_v8 = vpack.c.bf16 %v49_v5, %v47_v3  ;;  %v51_v10 = vld [vmem:[#allocation5 + $0x20] sm:$0xff]  ;;  %v53_v11 = vld [vmem:[#allocation5 + $0x30] sm:$0xff]  ;;  %v82_v54 = vshrl.u32 %v81_v53, 7  ;;  %v191_v58 = vunpack.c.l.s4 %v456_v57 }
  0x2c   :  { %v322_v9 = vpack.c.bf16 %v54_v7, %v52_v6  ;;  %v56_v12 = vld [vmem:[#allocation5 + $0x48] sm:$0xff]  ;;  %319 = vmatprep.subr.bf16.mxu0 %v318_v4  ;;  %350 = vmatprep.subr.bf16.mxu1 %v318_v4  ;;  %v58_v13 = vld [vmem:[#allocation5 + $0x58] sm:$0xff]  ;;  %v324_v14 = vpack.c.bf16 %v53_v11, %v51_v10  ;;  %v55_v16 = vld [vmem:[#allocation5 + $0x40] sm:$0xff] }
  0x2d   :  { %321 = vmatpush1.bf16.msra.mxu0 %v320_v8  ;;  %358 = vmatpush1.bf16.msra.mxu1 %v320_v8  ;;  %v326_v15 = vpack.c.bf16 %v58_v13, %v56_v12  ;;  %v57_v17 = vld [vmem:[#allocation5 + $0x50] sm:$0xff]  ;;  %v60_v18 = vld [vmem:[#allocation5 + $0x68] sm:$0xff]  ;;  %v62_v19 = vld [vmem:[#allocation5 + $0x78] sm:$0xff]  ;;  %v83_v55 = vsub.s32 0, %v82_v54  ;;  %v87_v59 = vsub.s32 1, %v82_v54  ;;  %v192_v61 = vunpack.c.0.s8 %v191_v58 }
  0x2e   :  { %323 = vmatprep.subr.bf16.mxu0 %v322_v9  ;;  %351 = vmatprep.subr.bf16.mxu1 %v322_v9  ;;  %v328_v20 = vpack.c.bf16 %v57_v17, %v55_v16  ;;  %v330_v21 = vpack.c.bf16 %v62_v19, %v60_v18  ;;  %v59_v22 = vld [vmem:[#allocation5 + $0x60] sm:$0xff]  ;;  %v61_v23 = vld [vmem:[#allocation5 + $0x70] sm:$0xff]  ;;  %v64_v24 = vld [vmem:[#allocation5 + $0x88] sm:$0xff] }
  0x2f   :  { %v66_v25 = vld [vmem:[#allocation5 + $0x98] sm:$0xff]  ;;  %v332_v26 = vpack.c.bf16 %v61_v23, %v59_v22  ;;  %v63_v28 = vld [vmem:[#allocation5 + $0x80] sm:$0xff]  ;;  %v65_v29 = vld [vmem:[#allocation5 + $0x90] sm:$0xff]  ;;  %v195_v5 = vsub.s32 %v192_v61, %v82_v54 }
  0x30   :  { %v334_v27 = vpack.c.bf16 %v66_v25, %v64_v24  ;;  %v68_v30 = vld [vmem:[#allocation5 + $0xa8] sm:$0xff]  ;;  %v70_v31 = vld [vmem:[#allocation5 + $0xb8] sm:$0xff]  ;;  %v336_v32 = vpack.c.bf16 %v65_v29, %v63_v28  ;;  %v67_v34 = vld [vmem:[#allocation5 + $0xa0] sm:$0xff] }
  0x31   :  { %325 = vmatpush1.bf16.msra.mxu0 %v324_v14  ;;  %359 = vmatpush1.bf16.msra.mxu1 %v324_v14  ;;  %v338_v33 = vpack.c.bf16 %v70_v31, %v68_v30  ;;  %v69_v35 = vld [vmem:[#allocation5 + $0xb0] sm:$0xff]  ;;  %v72_v36 = vld [vmem:[#allocation5 + $0xc8] sm:$0xff]  ;;  %v74_v37 = vld [vmem:[#allocation5 + $0xd8] sm:$0xff] }
  0x32   :  { %327 = vmatprep.subr.bf16.mxu0 %v326_v15  ;;  %352 = vmatprep.subr.bf16.mxu1 %v326_v15  ;;  %v340_v38 = vpack.c.bf16 %v69_v35, %v67_v34  ;;  %v342_v39 = vpack.c.bf16 %v74_v37, %v72_v36  ;;  %v71_v40 = vld [vmem:[#allocation5 + $0xc0] sm:$0xff]  ;;  %v73_v41 = vld [vmem:[#allocation5 + $0xd0] sm:$0xff]  ;;  %v76_v42 = vld [vmem:[#allocation5 + $0xe8] sm:$0xff] }
  0x33   :  { %v78_v43 = vld [vmem:[#allocation5 + $0xf8] sm:$0xff]  ;;  %v344_v44 = vpack.c.bf16 %v73_v41, %v71_v40  ;;  %v75_v46 = vld [vmem:[#allocation5 + $0xe0] sm:$0xff]  ;;  %v77_v47 = vld [vmem:[#allocation5 + $0xf0] sm:$0xff] }
  0x34   :  { %v346_v45 = vpack.c.bf16 %v78_v43, %v76_v42  ;;  %v348_v48 = vpack.c.bf16 %v77_v47, %v75_v46  ;;  %v43_v49 = vld [vmem:[#allocation2] sm:$0xff]  ;;  %v45_v50 = vld [vmem:[#allocation2 + $0x10] sm:$0xff]  ;;  %v44_v51 = vld [vmem:[#allocation2 + $0x8] sm:$0xff] }
  0x35   :  { %329 = vmatpush1.bf16.msra.mxu0 %v328_v20  ;;  %360 = vmatpush1.bf16.msra.mxu1 %v328_v20  ;;  %v46_v52 = vld [vmem:[#allocation2 + $0x18] sm:$0xff]  ;;  %v79_v56 = vld [vmem:[%s525_s2] sm:$0x3] }
  0x36   :  { %331 = vmatprep.subr.bf16.mxu0 %v330_v21  ;;  %353 = vmatprep.subr.bf16.mxu1 %v330_v21  ;;  %v84_v60 = vrot.slane %v79_v56, %v83_v55  ;;  %v88_v62 = vrot.slane %v79_v56, %v87_v59 }
  0x39   :  { %333 = vmatpush1.bf16.msra.mxu0 %v332_v26  ;;  %361 = vmatpush1.bf16.msra.mxu1 %v332_v26 }
  0x3a   :  { %335 = vmatprep.subr.bf16.mxu0 %v334_v27  ;;  %354 = vmatprep.subr.bf16.mxu1 %v334_v27 }
  0x3d   :  { %337 = vmatpush1.bf16.msra.mxu0 %v336_v32  ;;  %362 = vmatpush1.bf16.msra.mxu1 %v336_v32 }
  0x3e   :  { %339 = vmatprep.subr.bf16.mxu0 %v338_v33  ;;  %355 = vmatprep.subr.bf16.mxu1 %v338_v33 }
  0x41   :  { %341 = vmatpush1.bf16.msra.mxu0 %v340_v38  ;;  %363 = vmatpush1.bf16.msra.mxu1 %v340_v38 }
  0x42   :  { %343 = vmatprep.subr.bf16.mxu0 %v342_v39  ;;  %356 = vmatprep.subr.bf16.mxu1 %v342_v39 }
  0x45   :  { %345 = vmatpush1.bf16.msra.mxu0 %v344_v44  ;;  %364 = vmatpush1.bf16.msra.mxu1 %v344_v44 }
  0x46   :  { %347 = vmatprep.subr.bf16.mxu0 %v346_v45  ;;  %357 = vmatprep.subr.bf16.mxu1 %v346_v45 }
  0x49   :  { %349 = vmatpush1.bf16.msra.mxu0 %v348_v48  ;;  %365 = vmatpush1.bf16.msra.mxu1 %v348_v48 }
  0x4c   :  { %156 = vmatmul.mubr.f32.vlgmr.msra.gmra.mrb[0].mxu0 %v43_v49  ;;  %168 = vmatmul.mubr.f32.vlgmr.msra.gmra.mrb[0].mxu1 %v45_v50 }
  0x4d   :  { %161 = vmatprep.mubr.f32.mxu0 %v455_v0  ;;  %173 = vmatprep.mubr.f32.mxu1 %v455_v0 }
  0x50   :  { %162 = vmatmul.mubr.f32.gmra.mrb[2].mxu0 %v44_v51  ;;  %174 = vmatmul.mubr.f32.gmra.mrb[2].mxu1 %v46_v52 }
 0x11f   :  { %v157_v63 = vpop.f32.mrb[0].mxu0  ;;  %v169_v1 = vpop.f32.mrb[0].mxu1 }
 0x120   :  { %v158_v0 = vadd.f32 %v157_v63, %v84_v60  ;;  %v170_v2 = vadd.f32 %v169_v1, %v84_v60  ;;  %v159_v3 = vpop.f32.mrb[1].mxu0  ;;  %v171_v4 = vpop.f32.mrb[1].mxu1 }
 0x121   :  { %v160_v6 = vadd.f32 %v159_v3, %v88_v62  ;;  %v172_v7 = vadd.f32 %v171_v4, %v88_v62 }
 0x123   :  { %v188_v8 = vcombine.low %v158_v0, %v160_v6  ;;  %v189_v9 = vcombine.high %v158_v0, %v160_v6  ;;  %v224_v10 = vcombine.low %v170_v2, %v172_v7  ;;  %v225_v11 = vcombine.high %v170_v2, %v172_v7  ;;  %v163_v12 = vpop.f32.mrb[2].mxu0  ;;  %v175_v13 = vpop.f32.mrb[2].mxu1 }
 0x124   :  { %v164_v14 = vadd.f32 %v163_v12, %v84_v60  ;;  %v176_v15 = vadd.f32 %v175_v13, %v84_v60  ;;  %v165_v16 = vpop.f32.mrb[3].mxu0  ;;  %v177_v17 = vpop.f32.mrb[3].mxu1 }
 0x125   :  { %v196_v18 = vrot.slane %v188_v8, %v195_v5  ;;  %v203_v19 = vrot.slane %v189_v9, %v195_v5  ;;  %310 = vst.sshfl [vmem:[#allocation7] sm:$0x33 pattern:$0x76325410] %v188_v8  ;;  %v232_v20 = vrot.slane %v224_v10, %v195_v5  ;;  %v239_v21 = vrot.slane %v225_v11, %v195_v5 }
 0x126   :  { %311 = vst.sshfl [vmem:[#allocation7 + $0x8] sm:$0x33 pattern:$0x76325410] %v189_v9  ;;  %v166_v22 = vadd.f32 %v165_v16, %v88_v62  ;;  %v178_v23 = vadd.f32 %v177_v17, %v88_v62 }
 0x127   :  { %314 = vst.sshfl [vmem:[#allocation7 + $0x20] sm:$0x33 pattern:$0x76325410] %v224_v10  ;;  %v204_v24 = vcombine.high %v196_v18, %v196_v18  ;;  %v205_v25 = vcombine.high %v203_v19, %v203_v19  ;;  %v240_v26 = vcombine.high %v232_v20, %v232_v20  ;;  %v241_v27 = vcombine.high %v239_v21, %v239_v21 }
 0x128   :  { %315 = vst.sshfl [vmem:[#allocation7 + $0x28] sm:$0x33 pattern:$0x76325410] %v225_v11  ;;  %v206_v28 = vcombine.low %v164_v14, %v166_v22  ;;  %v207_v29 = vcombine.high %v164_v14, %v166_v22  ;;  %v242_v30 = vcombine.low %v176_v15, %v178_v23  ;;  %v243_v31 = vcombine.high %v176_v15, %v178_v23 }
 0x129   :  { %277 = vst [vmem:[#allocation7 + $0x4] sm:$0xf] %v204_v24  ;;  %279 = vst [vmem:[#allocation7 + $0xc] sm:$0xf] %v205_v25 }
 0x12a   :  { %285 = vst [vmem:[#allocation7 + $0x24] sm:$0xf] %v240_v26  ;;  %287 = vst [vmem:[#allocation7 + $0x2c] sm:$0xf] %v241_v27  ;;  %v214_v32 = vrot.slane %v206_v28, %v195_v5  ;;  %v221_v33 = vrot.slane %v207_v29, %v195_v5  ;;  %v250_v34 = vrot.slane %v242_v30, %v195_v5 }
 0x12b   :  { %312 = vst.sshfl [vmem:[#allocation7 + $0x10] sm:$0x33 pattern:$0x76325410] %v206_v28  ;;  %v257_v35 = vrot.slane %v243_v31, %v195_v5 }
 0x12c   :  { %313 = vst.sshfl [vmem:[#allocation7 + $0x18] sm:$0x33 pattern:$0x76325410] %v207_v29  ;;  %v222_v36 = vcombine.high %v214_v32, %v214_v32  ;;  %v223_v37 = vcombine.high %v221_v33, %v221_v33  ;;  %v258_v38 = vcombine.high %v250_v34, %v250_v34 }
 0x12d   :  { %316 = vst.sshfl [vmem:[#allocation7 + $0x30] sm:$0x33 pattern:$0x76325410] %v242_v30  ;;  %v259_v39 = vcombine.high %v257_v35, %v257_v35 }
 0x12e   :  { %317 = vst.sshfl [vmem:[#allocation7 + $0x38] sm:$0x33 pattern:$0x76325410] %v243_v31  ;;  %281 = vst [vmem:[#allocation7 + $0x14] sm:$0xf] %v222_v36 }
 0x12f   :  { %283 = vst [vmem:[#allocation7 + $0x1c] sm:$0xf] %v223_v37  ;;  %289 = vst [vmem:[#allocation7 + $0x34] sm:$0xf] %v258_v38 }
 0x130   :  { %291 = vst [vmem:[#allocation7 + $0x3c] sm:$0xf] %v259_v39 }
 0x131   :  { %296 = vsyncadd [#allocation4], 960  ;;  %s457_s2 = smov [#allocation7]  }
 0x132   :  { %s297_s14 = sshll.u32 %s457_s2, 4  ;;  %s298_s14 = int_to_ptr.vmem [resolvable:$true] %s297_s14 }
 0x133   :  { %s421_s15 = scalar_lea.vmem %s298_s14, 64  ;;  %s425_s16 = scalar_lea.vmem %s298_s14, 1024 }
 0x134   :  { %p422_p2 = scmp.ne.s32.totalorder %s298_s14, %s421_s15  ;;  %p426_p3 = scmp.lt.s32.totalorder %s298_s14, %s298_s14 }
 0x135   :  { %p427_p4 = scmp.lt.s32.totalorder %s425_s16, %s421_s15 }
 0x137   :  { %p428_p5 = por %p427_p4, %p426_p3 }
 0x139   :  { %p429_p6 = pnand %p428_p5, %p422_p2 }
 0x13b   :  { %432 = shalt.err (!%p429_p6)
}
 0x13c   :  { %s433_s19 = scalar_lea.hbm %s526_s3, 64 }
 0x13d   :  { %p434_p7 = scmp.ne.s32.totalorder %s526_s3, %s433_s19  ;;  %p437_p8 = scmp.lt.u32.totalorder %s433_s19, %s526_s3 }
 0x13f   :  { %p439_p9 = pnand %p437_p8, %p434_p7 }
 0x141   :  { %442 = shalt.err (!%p439_p9)
}
 0x142   :  { %s458_s24 = smov 64   ;;  %s459_s25 = smov 4  }
 0x143   :  { %303 = dma.vmem_to_hbm [thread:$0]  %s298_s14, 64, %s526_s3, [#allocation4], %s458_s24, %s458_s24, %s459_s25  }
 0x144   :  { %447 = dma.done.wait [#allocation4], 1024  }
 0x145   :  { %448 = vsyncadd [#allocation4], 4294966272 }
 0x146   :  { %307 = vsyncpa [#allocation3], 1 }
 0x147   :  { %308 = vsyncpa [#allocation6], 1 }
 0x148   :  { %309 = vsyncpa [#allocation4], 1 }

</bundles_post_ra>
